<compile_context>
chip_gen: v7x
topology: tpu7x:2x2x1
jax: 0.10.0
libtpu: 0.0.40
codegen_flags: <defaults>
</compile_context>

<pallas_src>
import functools

import jax
import jax.numpy as jnp
from jax import lax
from jax.experimental import pallas as pl
from jax.experimental.pallas import tpu as pltpu


def _ns_step(carry, *, eye3, dot_dtype):
    """One coupled Newton-Schulz iteration; carries stay f32, dots may be bf16."""
    y, z = carry
    zy = jnp.dot(z.astype(dot_dtype), y.astype(dot_dtype),
                 preferred_element_type=jnp.float32)
    t = 0.5 * (eye3 - zy)                       # elementwise kept in f32 (VPU)
    y = jnp.dot(y.astype(dot_dtype), t.astype(dot_dtype),
                preferred_element_type=jnp.float32)
    z = jnp.dot(t.astype(dot_dtype), z.astype(dot_dtype),
                preferred_element_type=jnp.float32)
    return (y, z)


def _nuclear_loss_kernel(
    a_ref, lw_ref, out_ref, g_acc,
    *, ns_iters: int, contract_axis: int, k_total: int, tk: int,
    unroll, use_bf16_dots: bool, f32_tail_iters: int,
):
    k = pl.program_id(0)
    last = pl.num_programs(0) - 1

    # ---- phase 1: streamed Gram accumulation  G += contract(A_k, A_k) -------
    @pl.when(k == 0)
    def _():
        g_acc[...] = jnp.zeros_like(g_acc)

    # Gram is symmetric, so either contraction orientation yields the same G;
    # the orientation matching the HBM layout is chosen statically (no x.T,
    # no extra HBM round-trip).
    contract = (((contract_axis,), (contract_axis,)), ((), ()))

    def accumulate(a):
        g_acc[...] += lax.dot_general(a, a, contract,
                                      preferred_element_type=jnp.float32)

    if k_total % tk == 0:
        # No padded tail: clean steady-state dot every step.
        accumulate(a_ref[...])
    else:
        @pl.when(k < last)
        def _():
            accumulate(a_ref[...])

        @pl.when(k == last)
        def _():
            # Mask only the padded tail of the final contraction tile.
            a = a_ref[...]
            idx = lax.broadcasted_iota(jnp.int32, a.shape, contract_axis)
            accumulate(jnp.where(k * tk + idx < k_total, a, jnp.zeros_like(a)))

    # ---- phase 2 (last grid step only): Newton-Schulz sqrt(G) + trace -------
    @pl.when(k == last)
    def _():
        g = g_acc[...]
        m = g.shape[0]

        # Spectral-norm upper bound: min(||G||_F, ||G||_inf).  Tighter than
        # Frobenius alone for high-rank G -> faster NS convergence.
        fro = jnp.sqrt(jnp.sum(g * g))
        inf_norm = jnp.max(jnp.sum(jnp.abs(g), axis=1, keepdims=True))
        c = jnp.minimum(fro, inf_norm) + 1e-12

        row = lax.broadcasted_iota(jnp.int32, (m, m), 0)
        col = lax.broadcasted_iota(jnp.int32, (m, m), 1)
        eye = (row == col).astype(jnp.float32)
        eye3 = 3.0 * eye                        # hoisted: loop-invariant

        y0 = g / c
        z0 = eye

        if use_bf16_dots and ns_iters > f32_tail_iters:
            # Bulk of the iterations at bf16 MXU rate, last few in f32.
            n_lo = ns_iters - f32_tail_iters
            step_lo = functools.partial(_ns_step, eye3=eye3,
                                        dot_dtype=jnp.bfloat16)
            y, z = lax.fori_loop(0, n_lo, lambda _, cr: step_lo(cr),
                                 (y0, z0), unroll=unroll)
            step_hi = functools.partial(_ns_step, eye3=eye3,
                                        dot_dtype=jnp.float32)
            y, z = lax.fori_loop(0, f32_tail_iters, lambda _, cr: step_hi(cr),
                                 (y, z), unroll=True)
        else:
            step = functools.partial(_ns_step, eye3=eye3,
                                     dot_dtype=jnp.float32)
            y, z = lax.fori_loop(0, ns_iters, lambda _, cr: step(cr),
                                 (y0, z0), unroll=unroll)

        # sqrt(G) = sqrt(c) * Y ;  nuclear_norm(A) = trace(sqrt(G))
        out_ref[0, 0] = jnp.sum(y * eye) * jnp.sqrt(c) * lw_ref[0]


def _vmem_capacity_bytes() -> int:
    """Physical per-core VMEM, queried per generation; conservative fallback."""
    try:
        info = pltpu.get_tpu_info()
        cap = getattr(info, "vmem_capacity_bytes", None)
        if cap:
            return int(cap)
    except Exception:
        pass
    return 64 << 20  # conservative (v7x-sized) fallback


def _choose_tiling(gdim: int, k_total: int, itemsize: int):
    """Pick the contraction tile tk and a generation-aware vmem_limit_bytes."""
    cap = _vmem_capacity_bytes()
    scoped_cap = int(cap * 85 // 100)            # ~15% headroom for Pallas internals
    ns_bytes = 8 * gdim * gdim * 4 + (2 << 20)   # G scratch + NS temporaries + slack
    stream_budget = max(4 << 20, scoped_cap - ns_bytes)
    tk_max = stream_budget // max(1, 2 * gdim * itemsize)   # double-buffered tile

    if k_total <= tk_max:
        tk = k_total                              # one full block: no tail mask
    else:
        tk = max(128, (tk_max // 128) * 128)      # lane/MXU aligned
        tk = min(tk, k_total)

    vmem_est = 2 * gdim * tk * itemsize + 8 * gdim * gdim * 4 + (2 << 20)
    vmem_limit = int(min(scoped_cap, max(32 << 20, vmem_est * 5 // 4)))
    return tk, vmem_limit


def nuclear_loss(x: jax.Array, lw: jax.Array, *,
                 ns_iters: int = 16, use_bf16_dots=None) -> jax.Array:
    """lw * sum(singular_values(x)).  x: 2-D matrix (f32 or bf16), lw: shape-(1,)."""
    m, n = x.shape
    itemsize = jnp.dtype(x.dtype).itemsize

    # Gram over the smaller dim; stream (tile) over the larger dim, reading the
    # input from HBM exactly once in its native dtype (no transpose, no f32 copy).
    if m <= n:
        gdim, k_total, contract_axis = m, n, 1
    else:
        gdim, k_total, contract_axis = n, m, 0

    if use_bf16_dots is None:
        use_bf16_dots = gdim >= 512   # NS phase is compute-bound for square-ish inputs

    tk, vmem_limit = _choose_tiling(gdim, k_total, itemsize)
    grid = (pl.cdiv(k_total, tk),)

    if contract_axis == 1:
        a_spec = pl.BlockSpec((gdim, tk), lambda k: (0, k))
    else:
        a_spec = pl.BlockSpec((tk, gdim), lambda k: (k, 0))

    # Fully unroll the NS loop for small Gram dims (latency-bound); partially
    # for large ones to bound code size / vreg pressure.
    unroll = True if gdim <= 256 else 2

    cost = pl.CostEstimate(
        flops=int(2 * gdim * gdim * k_total + ns_iters * 6 * gdim ** 3),
        transcendentals=0,
        bytes_accessed=int(m * n * itemsize + 8),
    )

    kernel = functools.partial(
        _nuclear_loss_kernel,
        ns_iters=ns_iters, contract_axis=contract_axis,
        k_total=k_total, tk=tk, unroll=unroll,
        use_bf16_dots=bool(use_bf16_dots), f32_tail_iters=2,
    )

    out = pl.pallas_call(
        kernel,
        out_shape=jax.ShapeDtypeStruct((1, 1), jnp.float32),
        grid_spec=pltpu.PrefetchScalarGridSpec(
            num_scalar_prefetch=0,
            grid=grid,
            in_specs=[
                a_spec,                                             # A tiles (native dtype)
                pl.BlockSpec(memory_space=pltpu.MemorySpace.SMEM),  # lw scalar
            ],
            out_specs=pl.BlockSpec((1, 1), lambda k: (0, 0),
                                   memory_space=pltpu.MemorySpace.SMEM),
            scratch_shapes=[pltpu.VMEM((gdim, gdim), jnp.float32)],  # G accumulator
        ),
        compiler_params=pltpu.CompilerParams(
            dimension_semantics=("arbitrary",),   # K axis is a reduction
            vmem_limit_bytes=vmem_limit,
        ),
        cost_estimate=cost,
    )(x, lw.astype(jnp.float32).reshape((1,)))
    return out[0, 0]


if __name__ == "__main__":
    key = jax.random.PRNGKey(0)
    M, N = 16, 32
    x = jax.random.normal(key, (M, N), dtype=jnp.float32)

    # Deterministic parameter init matching NuclearLoss.__init__(lw=tensor(1.0)).
    lw = jnp.array([1.0], dtype=jnp.float32)

    loss = nuclear_loss(x, lw)
    loss = jax.block_until_ready(loss)

    # Reference: lw * sum of singular values.
    ref = float(lw[0]) * float(jnp.sum(jnp.linalg.svd(x, compute_uv=False)))

    assert jnp.isfinite(loss), "kernel produced non-finite loss"
    assert abs(float(loss) - ref) <= 1e-2 * max(1.0, abs(ref)), (
        f"mismatch: kernel={float(loss)} ref={ref}"
    )

    print("KERNEL_OK")
</pallas_src>

<mosaic_0001>
module attributes {stable_mosaic.version = 11 : i64} {
  func.func @_nuclear_loss_kernel(%arg0: i32, %arg1: memref<16x32xf32, #tpu.memory_space<vmem>>, %arg2: memref<1xf32, #tpu.memory_space<smem>>, %arg3: memref<1x1xf32, #tpu.memory_space<smem>>, %arg4: memref<16x16xf32, #tpu.memory_space<vmem>>) attributes {dimension_semantics = [#tpu.dimension_semantics<arbitrary>], iteration_bounds = array<i64: 1>, scalar_prefetch = 0 : i64, scratch_operands = 1 : i64, tpu.core_type = #tpu.core_type<tc>, window_params = [{transform_indices = @transform_0, window_bounds = array<i64: 16, 32>}, {transform_indices = @transform_1, window_bounds = array<i64: 1>}, {transform_indices = @transform_2, window_bounds = array<i64: 1, 1>}]} {
    %c0_i32 = arith.constant 0 : i32
    %0 = arith.cmpi eq, %arg0, %c0_i32 : i32
    %1 = arith.extui %0 : i1 to i32
    %c0_i32_0 = arith.constant 0 : i32
    %2 = arith.cmpi ne, %1, %c0_i32_0 : i32
    scf.if %2 {
      %cst_8 = arith.constant 0.000000e+00 : f32
      %11 = vector.broadcast %cst_8 : f32 to vector<16x16xf32>
      %c0_9 = arith.constant 0 : index
      %c0_10 = arith.constant 0 : index
      %12 = vector.load %arg4[%c0_9, %c0_10] : memref<16x16xf32, #tpu.memory_space<vmem>>, vector<16x16xf32>
      tpu.vector_store %arg4[%c0_9, %c0_10], %11 {strides = array<i32>} : memref<16x16xf32, #tpu.memory_space<vmem>>, vector<16x16xf32>,
    } else {
    }
    %c0 = arith.constant 0 : index
    %c0_1 = arith.constant 0 : index
    %3 = vector.load %arg1[%c0, %c0_1] : memref<16x32xf32, #tpu.memory_space<vmem>>, vector<16x32xf32>
    %c0_2 = arith.constant 0 : index
    %c0_3 = arith.constant 0 : index
    %4 = vector.load %arg4[%c0_2, %c0_3] : memref<16x16xf32, #tpu.memory_space<vmem>>, vector<16x16xf32>
    %cst = arith.constant dense<0.000000e+00> : vector<16x16xf32>
    %5 = tpu.matmul %3, %3, %cst {dimension_numbers = #tpu.dot_dimension_numbers<[1], [1], [0], [0], [0, 0, 1, 0], [], []>} : vector<16x32xf32>, vector<16x32xf32>, vector<16x16xf32> -> vector<16x16xf32>
    %6 = arith.addf %4, %5 : vector<16x16xf32>
    %c0_4 = arith.constant 0 : index
    %c0_5 = arith.constant 0 : index
    %7 = vector.load %arg4[%c0_4, %c0_5] : memref<16x16xf32, #tpu.memory_space<vmem>>, vector<16x16xf32>
    tpu.vector_store %arg4[%c0_4, %c0_5], %6 {strides = array<i32>} : memref<16x16xf32, #tpu.memory_space<vmem>>, vector<16x16xf32>,
    %c0_i32_6 = arith.constant 0 : i32
    %8 = arith.cmpi eq, %arg0, %c0_i32_6 : i32
    %9 = arith.extui %8 : i1 to i32
    %c0_i32_7 = arith.constant 0 : i32
    %10 = arith.cmpi ne, %9, %c0_i32_7 : i32
    scf.if %10 {
      %c0_8 = arith.constant 0 : index
      %c0_9 = arith.constant 0 : index
      %11 = vector.load %arg4[%c0_8, %c0_9] : memref<16x16xf32, #tpu.memory_space<vmem>>, vector<16x16xf32>
      %12 = arith.mulf %11, %11 : vector<16x16xf32>
      %13 = vector.shape_cast %12 : vector<16x16xf32> to vector<1x16x16xf32>
      %cst_10 = arith.constant dense<0.000000e+00> : vector<1xf32>
      %14 = vector.multi_reduction <add>, %13, %cst_10 [1, 2] : vector<1x16x16xf32> to vector<1xf32>
      %15 = vector.shape_cast %14 : vector<1xf32> to vector<1x1x1xf32>
      %16 = vector.extract %15[0, 0, 0] : f32 from vector<1x1x1xf32>
      %17 = math.sqrt %16 : f32
      %18 = math.absf %11 : vector<16x16xf32>
      %cst_11 = arith.constant dense<0.000000e+00> : vector<16xf32>
      %19 = vector.multi_reduction <add>, %18, %cst_11 [1] : vector<16x16xf32> to vector<16xf32>
      %20 = vector.shape_cast %19 : vector<16xf32> to vector<16x1xf32>
      %21 = vector.shape_cast %20 : vector<16x1xf32> to vector<1x16x1xf32>
      %cst_12 = arith.constant dense<0xFF800000> : vector<1xf32>
      %22 = vector.multi_reduction <maximumf>, %21, %cst_12 [1, 2] : vector<1x16x1xf32> to vector<1xf32>
      %23 = vector.shape_cast %22 : vector<1xf32> to vector<1x1x1xf32>
      %24 = vector.extract %23[0, 0, 0] : f32 from vector<1x1x1xf32>
      %25 = arith.minimumf %17, %24 : f32
      %cst_13 = arith.constant 9.99999996E-13 : f32
      %26 = arith.addf %25, %cst_13 : f32
      %27 = tpu.iota {dimensions = array<i32: 0>} : vector<16x16xi32>
      %28 = tpu.iota {dimensions = array<i32: 1>} : vector<16x16xi32>
      %29 = arith.cmpi eq, %27, %28 : vector<16x16xi32>
      %30 = arith.extui %29 : vector<16x16xi1> to vector<16x16xi32>
      %31 = arith.sitofp %30 : vector<16x16xi32> to vector<16x16xf32>
      %cst_14 = arith.constant 3.000000e+00 : f32
      %32 = vector.broadcast %cst_14 : f32 to vector<16x16xf32>
      %33 = arith.mulf %32, %31 : vector<16x16xf32>
      %34 = vector.broadcast %26 : f32 to vector<16x16xf32>
      %35 = arith.divf %11, %34 : vector<16x16xf32>
      %c0_i32_15 = arith.constant 0 : i32
      %cst_16 = arith.constant dense<0.000000e+00> : vector<16x16xf32>
      %36 = tpu.matmul %31, %35, %cst_16 {dimension_numbers = #tpu.dot_dimension_numbers<[1], [0], [0], [1], [0, 0, 1, 1], [], []>} : vector<16x16xf32>, vector<16x16xf32>, vector<16x16xf32> -> vector<16x16xf32>
      %37 = arith.subf %33, %36 : vector<16x16xf32>
      %cst_17 = arith.constant 5.000000e-01 : f32
      %38 = vector.broadcast %cst_17 : f32 to vector<16x16xf32>
      %39 = arith.mulf %38, %37 : vector<16x16xf32>
      %cst_18 = arith.constant dense<0.000000e+00> : vector<16x16xf32>
      %40 = tpu.matmul %35, %39, %cst_18 {dimension_numbers = #tpu.dot_dimension_numbers<[1], [0], [0], [1], [0, 0, 1, 1], [], []>} : vector<16x16xf32>, vector<16x16xf32>, vector<16x16xf32> -> vector<16x16xf32>
      %cst_19 = arith.constant dense<0.000000e+00> : vector<16x16xf32>
      %41 = tpu.matmul %39, %31, %cst_19 {dimension_numbers = #tpu.dot_dimension_numbers<[1], [0], [0], [1], [0, 0, 1, 1], [], []>} : vector<16x16xf32>, vector<16x16xf32>, vector<16x16xf32> -> vector<16x16xf32>
      %c1_i32 = arith.constant 1 : i32
      %cst_20 = arith.constant dense<0.000000e+00> : vector<16x16xf32>
      %42 = tpu.matmul %41, %40, %cst_20 {dimension_numbers = #tpu.dot_dimension_numbers<[1], [0], [0], [1], [0, 0, 1, 1], [], []>} : vector<16x16xf32>, vector<16x16xf32>, vector<16x16xf32> -> vector<16x16xf32>
      %43 = arith.subf %33, %42 : vector<16x16xf32>
      %cst_21 = arith.constant 5.000000e-01 : f32
      %44 = vector.broadcast %cst_21 : f32 to vector<16x16xf32>
      %45 = arith.mulf %44, %43 : vector<16x16xf32>
      %cst_22 = arith.constant dense<0.000000e+00> : vector<16x16xf32>
      %46 = tpu.matmul %40, %45, %cst_22 {dimension_numbers = #tpu.dot_dimension_numbers<[1], [0], [0], [1], [0, 0, 1, 1], [], []>} : vector<16x16xf32>, vector<16x16xf32>, vector<16x16xf32> -> vector<16x16xf32>
      %cst_23 = arith.constant dense<0.000000e+00> : vector<16x16xf32>
      %47 = tpu.matmul %45, %41, %cst_23 {dimension_numbers = #tpu.dot_dimension_numbers<[1], [0], [0], [1], [0, 0, 1, 1], [], []>} : vector<16x16xf32>, vector<16x16xf32>, vector<16x16xf32> -> vector<16x16xf32>
      %c2_i32 = arith.constant 2 : i32
      %cst_24 = arith.constant dense<0.000000e+00> : vector<16x16xf32>
      %48 = tpu.matmul %47, %46, %cst_24 {dimension_numbers = #tpu.dot_dimension_numbers<[1], [0], [0], [1], [0, 0, 1, 1], [], []>} : vector<16x16xf32>, vector<16x16xf32>, vector<16x16xf32> -> vector<16x16xf32>
      %49 = arith.subf %33, %48 : vector<16x16xf32>
      %cst_25 = arith.constant 5.000000e-01 : f32
      %50 = vector.broadcast %cst_25 : f32 to vector<16x16xf32>
      %51 = arith.mulf %50, %49 : vector<16x16xf32>
      %cst_26 = arith.constant dense<0.000000e+00> : vector<16x16xf32>
      %52 = tpu.matmul %46, %51, %cst_26 {dimension_numbers = #tpu.dot_dimension_numbers<[1], [0], [0], [1], [0, 0, 1, 1], [], []>} : vector<16x16xf32>, vector<16x16xf32>, vector<16x16xf32> -> vector<16x16xf32>
      %cst_27 = arith.constant dense<0.000000e+00> : vector<16x16xf32>
      %53 = tpu.matmul %51, %47, %cst_27 {dimension_numbers = #tpu.dot_dimension_numbers<[1], [0], [0], [1], [0, 0, 1, 1], [], []>} : vector<16x16xf32>, vector<16x16xf32>, vector<16x16xf32> -> vector<16x16xf32>
      %c3_i32 = arith.constant 3 : i32
      %cst_28 = arith.constant dense<0.000000e+00> : vector<16x16xf32>
      %54 = tpu.matmul %53, %52, %cst_28 {dimension_numbers = #tpu.dot_dimension_numbers<[1], [0], [0], [1], [0, 0, 1, 1], [], []>} : vector<16x16xf32>, vector<16x16xf32>, vector<16x16xf32> -> vector<16x16xf32>
      %55 = arith.subf %33, %54 : vector<16x16xf32>
      %cst_29 = arith.constant 5.000000e-01 : f32
      %56 = vector.broadcast %cst_29 : f32 to vector<16x16xf32>
      %57 = arith.mulf %56, %55 : vector<16x16xf32>
      %cst_30 = arith.constant dense<0.000000e+00> : vector<16x16xf32>
      %58 = tpu.matmul %52, %57, %cst_30 {dimension_numbers = #tpu.dot_dimension_numbers<[1], [0], [0], [1], [0, 0, 1, 1], [], []>} : vector<16x16xf32>, vector<16x16xf32>, vector<16x16xf32> -> vector<16x16xf32>
      %cst_31 = arith.constant dense<0.000000e+00> : vector<16x16xf32>
      %59 = tpu.matmul %57, %53, %cst_31 {dimension_numbers = #tpu.dot_dimension_numbers<[1], [0], [0], [1], [0, 0, 1, 1], [], []>} : vector<16x16xf32>, vector<16x16xf32>, vector<16x16xf32> -> vector<16x16xf32>
      %c4_i32 = arith.constant 4 : i32
      %cst_32 = arith.constant dense<0.000000e+00> : vector<16x16xf32>
      %60 = tpu.matmul %59, %58, %cst_32 {dimension_numbers = #tpu.dot_dimension_numbers<[1], [0], [0], [1], [0, 0, 1, 1], [], []>} : vector<16x16xf32>, vector<16x16xf32>, vector<16x16xf32> -> vector<16x16xf32>
      %61 = arith.subf %33, %60 : vector<16x16xf32>
      %cst_33 = arith.constant 5.000000e-01 : f32
      %62 = vector.broadcast %cst_33 : f32 to vector<16x16xf32>
      %63 = arith.mulf %62, %61 : vector<16x16xf32>
      %cst_34 = arith.constant dense<0.000000e+00> : vector<16x16xf32>
      %64 = tpu.matmul %58, %63, %cst_34 {dimension_numbers = #tpu.dot_dimension_numbers<[1], [0], [0], [1], [0, 0, 1, 1], [], []>} : vector<16x16xf32>, vector<16x16xf32>, vector<16x16xf32> -> vector<16x16xf32>
      %cst_35 = arith.constant dense<0.000000e+00> : vector<16x16xf32>
      %65 = tpu.matmul %63, %59, %cst_35 {dimension_numbers = #tpu.dot_dimension_numbers<[1], [0], [0], [1], [0, 0, 1, 1], [], []>} : vector<16x16xf32>, vector<16x16xf32>, vector<16x16xf32> -> vector<16x16xf32>
      %c5_i32 = arith.constant 5 : i32
      %cst_36 = arith.constant dense<0.000000e+00> : vector<16x16xf32>
      %66 = tpu.matmul %65, %64, %cst_36 {dimension_numbers = #tpu.dot_dimension_numbers<[1], [0], [0], [1], [0, 0, 1, 1], [], []>} : vector<16x16xf32>, vector<16x16xf32>, vector<16x16xf32> -> vector<16x16xf32>
      %67 = arith.subf %33, %66 : vector<16x16xf32>
      %cst_37 = arith.constant 5.000000e-01 : f32
      %68 = vector.broadcast %cst_37 : f32 to vector<16x16xf32>
      %69 = arith.mulf %68, %67 : vector<16x16xf32>
      %cst_38 = arith.constant dense<0.000000e+00> : vector<16x16xf32>
      %70 = tpu.matmul %64, %69, %cst_38 {dimension_numbers = #tpu.dot_dimension_numbers<[1], [0], [0], [1], [0, 0, 1, 1], [], []>} : vector<16x16xf32>, vector<16x16xf32>, vector<16x16xf32> -> vector<16x16xf32>
      %cst_39 = arith.constant dense<0.000000e+00> : vector<16x16xf32>
      %71 = tpu.matmul %69, %65, %cst_39 {dimension_numbers = #tpu.dot_dimension_numbers<[1], [0], [0], [1], [0, 0, 1, 1], [], []>} : vector<16x16xf32>, vector<16x16xf32>, vector<16x16xf32> -> vector<16x16xf32>
      %c6_i32 = arith.constant 6 : i32
      %cst_40 = arith.constant dense<0.000000e+00> : vector<16x16xf32>
      %72 = tpu.matmul %71, %70, %cst_40 {dimension_numbers = #tpu.dot_dimension_numbers<[1], [0], [0], [1], [0, 0, 1, 1], [], []>} : vector<16x16xf32>, vector<16x16xf32>, vector<16x16xf32> -> vector<16x16xf32>
      %73 = arith.subf %33, %72 : vector<16x16xf32>
      %cst_41 = arith.constant 5.000000e-01 : f32
      %74 = vector.broadcast %cst_41 : f32 to vector<16x16xf32>
      %75 = arith.mulf %74, %73 : vector<16x16xf32>
      %cst_42 = arith.constant dense<0.000000e+00> : vector<16x16xf32>
      %76 = tpu.matmul %70, %75, %cst_42 {dimension_numbers = #tpu.dot_dimension_numbers<[1], [0], [0], [1], [0, 0, 1, 1], [], []>} : vector<16x16xf32>, vector<16x16xf32>, vector<16x16xf32> -> vector<16x16xf32>
      %cst_43 = arith.constant dense<0.000000e+00> : vector<16x16xf32>
      %77 = tpu.matmul %75, %71, %cst_43 {dimension_numbers = #tpu.dot_dimension_numbers<[1], [0], [0], [1], [0, 0, 1, 1], [], []>} : vector<16x16xf32>, vector<16x16xf32>, vector<16x16xf32> -> vector<16x16xf32>
      %c7_i32 = arith.constant 7 : i32
      %cst_44 = arith.constant dense<0.000000e+00> : vector<16x16xf32>
      %78 = tpu.matmul %77, %76, %cst_44 {dimension_numbers = #tpu.dot_dimension_numbers<[1], [0], [0], [1], [0, 0, 1, 1], [], []>} : vector<16x16xf32>, vector<16x16xf32>, vector<16x16xf32> -> vector<16x16xf32>
      %79 = arith.subf %33, %78 : vector<16x16xf32>
      %cst_45 = arith.constant 5.000000e-01 : f32
      %80 = vector.broadcast %cst_45 : f32 to vector<16x16xf32>
      %81 = arith.mulf %80, %79 : vector<16x16xf32>
      %cst_46 = arith.constant dense<0.000000e+00> : vector<16x16xf32>
      %82 = tpu.matmul %76, %81, %cst_46 {dimension_numbers = #tpu.dot_dimension_numbers<[1], [0], [0], [1], [0, 0, 1, 1], [], []>} : vector<16x16xf32>, vector<16x16xf32>, vector<16x16xf32> -> vector<16x16xf32>
      %cst_47 = arith.constant dense<0.000000e+00> : vector<16x16xf32>
      %83 = tpu.matmul %81, %77, %cst_47 {dimension_numbers = #tpu.dot_dimension_numbers<[1], [0], [0], [1], [0, 0, 1, 1], [], []>} : vector<16x16xf32>, vector<16x16xf32>, vector<16x16xf32> -> vector<16x16xf32>
      %c8_i32 = arith.constant 8 : i32
      %cst_48 = arith.constant dense<0.000000e+00> : vector<16x16xf32>
      %84 = tpu.matmul %83, %82, %cst_48 {dimension_numbers = #tpu.dot_dimension_numbers<[1], [0], [0], [1], [0, 0, 1, 1], [], []>} : vector<16x16xf32>, vector<16x16xf32>, vector<16x16xf32> -> vector<16x16xf32>
      %85 = arith.subf %33, %84 : vector<16x16xf32>
      %cst_49 = arith.constant 5.000000e-01 : f32
      %86 = vector.broadcast %cst_49 : f32 to vector<16x16xf32>
      %87 = arith.mulf %86, %85 : vector<16x16xf32>
      %cst_50 = arith.constant dense<0.000000e+00> : vector<16x16xf32>
      %88 = tpu.matmul %82, %87, %cst_50 {dimension_numbers = #tpu.dot_dimension_numbers<[1], [0], [0], [1], [0, 0, 1, 1], [], []>} : vector<16x16xf32>, vector<16x16xf32>, vector<16x16xf32> -> vector<16x16xf32>
      %cst_51 = arith.constant dense<0.000000e+00> : vector<16x16xf32>
      %89 = tpu.matmul %87, %83, %cst_51 {dimension_numbers = #tpu.dot_dimension_numbers<[1], [0], [0], [1], [0, 0, 1, 1], [], []>} : vector<16x16xf32>, vector<16x16xf32>, vector<16x16xf32> -> vector<16x16xf32>
      %c9_i32 = arith.constant 9 : i32
      %cst_52 = arith.constant dense<0.000000e+00> : vector<16x16xf32>
      %90 = tpu.matmul %89, %88, %cst_52 {dimension_numbers = #tpu.dot_dimension_numbers<[1], [0], [0], [1], [0, 0, 1, 1], [], []>} : vector<16x16xf32>, vector<16x16xf32>, vector<16x16xf32> -> vector<16x16xf32>
      %91 = arith.subf %33, %90 : vector<16x16xf32>
      %cst_53 = arith.constant 5.000000e-01 : f32
      %92 = vector.broadcast %cst_53 : f32 to vector<16x16xf32>
      %93 = arith.mulf %92, %91 : vector<16x16xf32>
      %cst_54 = arith.constant dense<0.000000e+00> : vector<16x16xf32>
      %94 = tpu.matmul %88, %93, %cst_54 {dimension_numbers = #tpu.dot_dimension_numbers<[1], [0], [0], [1], [0, 0, 1, 1], [], []>} : vector<16x16xf32>, vector<16x16xf32>, vector<16x16xf32> -> vector<16x16xf32>
      %cst_55 = arith.constant dense<0.000000e+00> : vector<16x16xf32>
      %95 = tpu.matmul %93, %89, %cst_55 {dimension_numbers = #tpu.dot_dimension_numbers<[1], [0], [0], [1], [0, 0, 1, 1], [], []>} : vector<16x16xf32>, vector<16x16xf32>, vector<16x16xf32> -> vector<16x16xf32>
      %c10_i32 = arith.constant 10 : i32
      %cst_56 = arith.constant dense<0.000000e+00> : vector<16x16xf32>
      %96 = tpu.matmul %95, %94, %cst_56 {dimension_numbers = #tpu.dot_dimension_numbers<[1], [0], [0], [1], [0, 0, 1, 1], [], []>} : vector<16x16xf32>, vector<16x16xf32>, vector<16x16xf32> -> vector<16x16xf32>
      %97 = arith.subf %33, %96 : vector<16x16xf32>
      %cst_57 = arith.constant 5.000000e-01 : f32
      %98 = vector.broadcast %cst_57 : f32 to vector<16x16xf32>
      %99 = arith.mulf %98, %97 : vector<16x16xf32>
      %cst_58 = arith.constant dense<0.000000e+00> : vector<16x16xf32>
      %100 = tpu.matmul %94, %99, %cst_58 {dimension_numbers = #tpu.dot_dimension_numbers<[1], [0], [0], [1], [0, 0, 1, 1], [], []>} : vector<16x16xf32>, vector<16x16xf32>, vector<16x16xf32> -> vector<16x16xf32>
      %cst_59 = arith.constant dense<0.000000e+00> : vector<16x16xf32>
      %101 = tpu.matmul %99, %95, %cst_59 {dimension_numbers = #tpu.dot_dimension_numbers<[1], [0], [0], [1], [0, 0, 1, 1], [], []>} : vector<16x16xf32>, vector<16x16xf32>, vector<16x16xf32> -> vector<16x16xf32>
      %c11_i32 = arith.constant 11 : i32
      %cst_60 = arith.constant dense<0.000000e+00> : vector<16x16xf32>
      %102 = tpu.matmul %101, %100, %cst_60 {dimension_numbers = #tpu.dot_dimension_numbers<[1], [0], [0], [1], [0, 0, 1, 1], [], []>} : vector<16x16xf32>, vector<16x16xf32>, vector<16x16xf32> -> vector<16x16xf32>
      %103 = arith.subf %33, %102 : vector<16x16xf32>
      %cst_61 = arith.constant 5.000000e-01 : f32
      %104 = vector.broadcast %cst_61 : f32 to vector<16x16xf32>
      %105 = arith.mulf %104, %103 : vector<16x16xf32>
      %cst_62 = arith.constant dense<0.000000e+00> : vector<16x16xf32>
      %106 = tpu.matmul %100, %105, %cst_62 {dimension_numbers = #tpu.dot_dimension_numbers<[1], [0], [0], [1], [0, 0, 1, 1], [], []>} : vector<16x16xf32>, vector<16x16xf32>, vector<16x16xf32> -> vector<16x16xf32>
      %cst_63 = arith.constant dense<0.000000e+00> : vector<16x16xf32>
      %107 = tpu.matmul %105, %101, %cst_63 {dimension_numbers = #tpu.dot_dimension_numbers<[1], [0], [0], [1], [0, 0, 1, 1], [], []>} : vector<16x16xf32>, vector<16x16xf32>, vector<16x16xf32> -> vector<16x16xf32>
      %c12_i32 = arith.constant 12 : i32
      %cst_64 = arith.constant dense<0.000000e+00> : vector<16x16xf32>
      %108 = tpu.matmul %107, %106, %cst_64 {dimension_numbers = #tpu.dot_dimension_numbers<[1], [0], [0], [1], [0, 0, 1, 1], [], []>} : vector<16x16xf32>, vector<16x16xf32>, vector<16x16xf32> -> vector<16x16xf32>
      %109 = arith.subf %33, %108 : vector<16x16xf32>
      %cst_65 = arith.constant 5.000000e-01 : f32
      %110 = vector.broadcast %cst_65 : f32 to vector<16x16xf32>
      %111 = arith.mulf %110, %109 : vector<16x16xf32>
      %cst_66 = arith.constant dense<0.000000e+00> : vector<16x16xf32>
      %112 = tpu.matmul %106, %111, %cst_66 {dimension_numbers = #tpu.dot_dimension_numbers<[1], [0], [0], [1], [0, 0, 1, 1], [], []>} : vector<16x16xf32>, vector<16x16xf32>, vector<16x16xf32> -> vector<16x16xf32>
      %cst_67 = arith.constant dense<0.000000e+00> : vector<16x16xf32>
      %113 = tpu.matmul %111, %107, %cst_67 {dimension_numbers = #tpu.dot_dimension_numbers<[1], [0], [0], [1], [0, 0, 1, 1], [], []>} : vector<16x16xf32>, vector<16x16xf32>, vector<16x16xf32> -> vector<16x16xf32>
      %c13_i32 = arith.constant 13 : i32
      %cst_68 = arith.constant dense<0.000000e+00> : vector<16x16xf32>
      %114 = tpu.matmul %113, %112, %cst_68 {dimension_numbers = #tpu.dot_dimension_numbers<[1], [0], [0], [1], [0, 0, 1, 1], [], []>} : vector<16x16xf32>, vector<16x16xf32>, vector<16x16xf32> -> vector<16x16xf32>
      %115 = arith.subf %33, %114 : vector<16x16xf32>
      %cst_69 = arith.constant 5.000000e-01 : f32
      %116 = vector.broadcast %cst_69 : f32 to vector<16x16xf32>
      %117 = arith.mulf %116, %115 : vector<16x16xf32>
      %cst_70 = arith.constant dense<0.000000e+00> : vector<16x16xf32>
      %118 = tpu.matmul %112, %117, %cst_70 {dimension_numbers = #tpu.dot_dimension_numbers<[1], [0], [0], [1], [0, 0, 1, 1], [], []>} : vector<16x16xf32>, vector<16x16xf32>, vector<16x16xf32> -> vector<16x16xf32>
      %cst_71 = arith.constant dense<0.000000e+00> : vector<16x16xf32>
      %119 = tpu.matmul %117, %113, %cst_71 {dimension_numbers = #tpu.dot_dimension_numbers<[1], [0], [0], [1], [0, 0, 1, 1], [], []>} : vector<16x16xf32>, vector<16x16xf32>, vector<16x16xf32> -> vector<16x16xf32>
      %c14_i32 = arith.constant 14 : i32
      %cst_72 = arith.constant dense<0.000000e+00> : vector<16x16xf32>
      %120 = tpu.matmul %119, %118, %cst_72 {dimension_numbers = #tpu.dot_dimension_numbers<[1], [0], [0], [1], [0, 0, 1, 1], [], []>} : vector<16x16xf32>, vector<16x16xf32>, vector<16x16xf32> -> vector<16x16xf32>
      %121 = arith.subf %33, %120 : vector<16x16xf32>
      %cst_73 = arith.constant 5.000000e-01 : f32
      %122 = vector.broadcast %cst_73 : f32 to vector<16x16xf32>
      %123 = arith.mulf %122, %121 : vector<16x16xf32>
      %cst_74 = arith.constant dense<0.000000e+00> : vector<16x16xf32>
      %124 = tpu.matmul %118, %123, %cst_74 {dimension_numbers = #tpu.dot_dimension_numbers<[1], [0], [0], [1], [0, 0, 1, 1], [], []>} : vector<16x16xf32>, vector<16x16xf32>, vector<16x16xf32> -> vector<16x16xf32>
      %cst_75 = arith.constant dense<0.000000e+00> : vector<16x16xf32>
      %125 = tpu.matmul %123, %119, %cst_75 {dimension_numbers = #tpu.dot_dimension_numbers<[1], [0], [0], [1], [0, 0, 1, 1], [], []>} : vector<16x16xf32>, vector<16x16xf32>, vector<16x16xf32> -> vector<16x16xf32>
      %c15_i32 = arith.constant 15 : i32
      %cst_76 = arith.constant dense<0.000000e+00> : vector<16x16xf32>
      %126 = tpu.matmul %125, %124, %cst_76 {dimension_numbers = #tpu.dot_dimension_numbers<[1], [0], [0], [1], [0, 0, 1, 1], [], []>} : vector<16x16xf32>, vector<16x16xf32>, vector<16x16xf32> -> vector<16x16xf32>
      %127 = arith.subf %33, %126 : vector<16x16xf32>
      %cst_77 = arith.constant 5.000000e-01 : f32
      %128 = vector.broadcast %cst_77 : f32 to vector<16x16xf32>
      %129 = arith.mulf %128, %127 : vector<16x16xf32>
      %cst_78 = arith.constant dense<0.000000e+00> : vector<16x16xf32>
      %130 = tpu.matmul %124, %129, %cst_78 {dimension_numbers = #tpu.dot_dimension_numbers<[1], [0], [0], [1], [0, 0, 1, 1], [], []>} : vector<16x16xf32>, vector<16x16xf32>, vector<16x16xf32> -> vector<16x16xf32>
      %cst_79 = arith.constant dense<0.000000e+00> : vector<16x16xf32>
      %131 = tpu.matmul %129, %125, %cst_79 {dimension_numbers = #tpu.dot_dimension_numbers<[1], [0], [0], [1], [0, 0, 1, 1], [], []>} : vector<16x16xf32>, vector<16x16xf32>, vector<16x16xf32> -> vector<16x16xf32>
      %132 = arith.mulf %130, %31 : vector<16x16xf32>
      %133 = vector.shape_cast %132 : vector<16x16xf32> to vector<1x16x16xf32>
      %cst_80 = arith.constant dense<0.000000e+00> : vector<1xf32>
      %134 = vector.multi_reduction <add>, %133, %cst_80 [1, 2] : vector<1x16x16xf32> to vector<1xf32>
      %135 = vector.shape_cast %134 : vector<1xf32> to vector<1x1x1xf32>
      %136 = vector.extract %135[0, 0, 0] : f32 from vector<1x1x1xf32>
      %137 = math.sqrt %26 : f32
      %138 = arith.mulf %136, %137 : f32
      %c0_81 = arith.constant 0 : index
      %139 = memref.load %arg2[%c0_81] : memref<1xf32, #tpu.memory_space<smem>>
      %140 = arith.mulf %138, %139 : f32
      %c0_82 = arith.constant 0 : index
      %c0_83 = arith.constant 0 : index
      %141 = memref.load %arg3[%c0_82, %c0_83] : memref<1x1xf32, #tpu.memory_space<smem>>
      memref.store %140, %arg3[%c0_82, %c0_83] : memref<1x1xf32, #tpu.memory_space<smem>>
    } else {
    }
    return
  }
  func.func @transform_0(%arg0: i32) -> (i32, i32) {
    %c0_i32 = arith.constant 0 : i32
    %c0_i32_0 = arith.constant 0 : i32
    return %c0_i32, %arg0 : i32, i32
  }
  func.func @transform_1(%arg0: i32) -> i32 {
    %c0_i32 = arith.constant 0 : i32
    %c0_i32_0 = arith.constant 0 : i32
    return %c0_i32 : i32
  }
  func.func @transform_2(%arg0: i32) -> (i32, i32) {
    %c0_i32 = arith.constant 0 : i32
    %c0_i32_0 = arith.constant 0 : i32
    %c0_i32_1 = arith.constant 0 : i32
    return %c0_i32, %c0_i32_0 : i32, i32
  }
}

</mosaic_0001>

<bundles_post_ra>
// kernel: tpu_custom_call.1
= control target key start
LH: loop header
LB: loop body
LE: loop exit
PB: predicated region body
PF: predicated region fallthrough
CT: control target
= control target key end

     0   :  { %8 = vsyncpa [#allocation5], 0  ;;  %s5198_s0 = inlined_call_operand.hbm [shape: f32[16,32], index: 0, kind: input, shape index: {}]   ;;  %s5199_s1 = inlined_call_operand.<no memory space> [shape: f32[1], index: 1, kind: input, shape index: {}]   ;;  %s5200_s2 = inlined_call_operand.hbm [shape: f32[1,1], index: 2, kind: output, shape index: {}]  }
   0x1   :  { %9 = vsyncpa [#allocation6], 0  ;;  %s4983_s9 = smov [#allocation4]   ;;  %s4947_s13 = scalar_lea.hbm %s5198_s0, 256 }
   0x2   :  { %s15_s10 = sshll.u32 %s4983_s9, 4  ;;  %p4948_p0 = scmp.ne.s32.totalorder %s5198_s0, %s4947_s13  ;;  %s16_s10 = int_to_ptr.vmem [resolvable:$true] %s15_s10 }
   0x3   :  { %p4951_p1 = scmp.lt.u32.totalorder %s4947_s13, %s5198_s0 }
   0x5   :  { %p4953_p2 = pnand %p4951_p1, %p4948_p0 }
   0x7   :  { %4956 = shalt.err (!%p4953_p2)
}
   0x8   :  { %s4957_s18 = scalar_lea.vmem %s16_s10, 256  ;;  %p4962_p4 = scmp.lt.s32.totalorder %s16_s10, %s16_s10 }
   0x9   :  { %p4958_p3 = scmp.ne.s32.totalorder %s16_s10, %s4957_s18  ;;  %p4963_p5 = scmp.lt.s32.totalorder %s4957_s18, %s4957_s18 }
   0xb   :  { %p4964_p6 = por %p4963_p5, %p4962_p4 }
   0xd   :  { %p4965_p7 = pnand %p4964_p6, %p4958_p3 }
   0xf   :  { %4968 = shalt.err (!%p4965_p7)
}
  0x10   :  { %s4984_s19 = smov 128   ;;  %s4985_s20 = smov 8  }
  0x11   :  { %21 = dma.hbm_to_vmem [thread:$0]  %s5198_s0, 256, %s16_s10, [#allocation5], %s4984_s19, %s4984_s19, %s4985_s20  }
  0x12   :  { %4979 = dma.done.wait [#allocation5], 256  }
  0x13   :  { %4980 = vsyncadd [#allocation5], 4294967040  ;;  %vm31_vm0 = vcmask 130048   ;;  %v4986_v0 = vmov 0.0   ;;  %vm38_vm1 = vcmask 261120   ;;  %v34_v1 = vld [vmem:[#allocation4] sm:$0xff]  ;;  %v171_v28 = vlaneseq }
  0x14   :  { %33 = vst.msk [vmem:[#allocation2 + $0x8] sm:$0xff] %vm31_vm0, %v4986_v0  ;;  %32 = vst.msk [vmem:[#allocation2] sm:$0xff] %vm31_vm0, %v4986_v0  ;;  %v35_v2 = vld [vmem:[#allocation4 + $0x8] sm:$0xff]  ;;  %4399 = vmatprep.mubr.msk.f32.mxu0 %vm38_vm1, %v34_v1  ;;  %v4987_v54 = vmov 1.0|1.0   ;;  %s4969_s7 = scalar_lea.hbm %s5200_s2, 16 }
  0x15   :  { %vm4732_vm2 = vmpackc.low %vm38_vm1, %vm38_vm1  ;;  %v4731_v3 = vpack.c.bf16 %v35_v2, %v34_v1  ;;  %v172_v29 = vshrl.u32 %v171_v28, 7  ;;  %v175_v30 = vand.u32 127, %v171_v28  ;;  %p4970_p8 = scmp.ne.s32.totalorder %s5200_s2, %s4969_s7  ;;  %p4973_p9 = scmp.lt.u32.totalorder %s4969_s7, %s5200_s2 }
  0x17   :  { %4733 = vmatprep.subr.msk.bf16.mxu0 %vm4732_vm2, %v4731_v3  ;;  %v173_v31 = vadd.s32 8, %v172_v29  ;;  %vm176_vm3 = vcmp.eq.s32.totalorder %v172_v29, %v175_v30  ;;  %p4975_p10 = pnand %p4973_p9, %p4970_p8 }
  0x18   :  { %4736 = vmatpush3.bf16.xpose.msk.msra.mxu0 %vm4732_vm2, %v4731_v3  ;;  %v5028_v32 = vsel %vm176_vm3, 1.0, %v4986_v0 }
  0x19   :  { %vm177_vm4 = vcmp.eq.s32.totalorder %v173_v31, %v175_v30  ;;  %4406 = vmatprep.mubr.msk.f32.mxu1 %vm31_vm0, %v5028_v32  ;;  %v5048_v56 = vmul.f32 3.0, %v5028_v32 }
  0x1a   :  { %v5037_v53 = vsel %vm177_vm4, 1.0, %v4986_v0  ;;  %vm4745_vm7 = vmpackc.low %vm177_vm4, %vm176_vm3 }
  0x1b   :  { %v37_v4 = vld [vmem:[#allocation2 + $0x8] sm:$0xff]  ;;  %v36_v5 = vld [vmem:[#allocation2] sm:$0xff]  ;;  %4746 = vmatprep.subr.msk.bf16.mxu0 %vm4745_vm7, %v4987_v54  ;;  %v5045_v55 = vmul.f32 3.0, %v5037_v53 }
  0x1f   :  { %4400 = vmatmul.mubr.msk.f32.vlgmr.msra.gmra.mrb[0].mxu0 %vm38_vm1, %v35_v2 }
  0x20   :  { %4748 = vmatpush3.bf16.msk.msra.mxu0 %vm4745_vm7, %v4987_v54 }
  0xf2   :  { %v4401_v6 = vpop.f32.mrb[0].mxu0 }
  0xf3   :  { %v121_v7 = vadd.f32 %v4401_v6, %v37_v4  ;;  %v111_v8 = vpop.f32.mrb[1].mxu0 }
  0xf4   :  { %v120_v9 = vadd.f32 %v111_v8, %v36_v5 }
  0xf5   :  { %124 = vst.msk [vmem:[#allocation2 + $0x8] sm:$0xff] %vm31_vm0, %v121_v7 }
  0xf6   :  { %123 = vst.msk [vmem:[#allocation2] sm:$0xff] %vm31_vm0, %v120_v9 }
  0xfc   :  { %v129_v10 = vld [vmem:[#allocation2 + $0x8] sm:$0xff] }
  0xfd   :  { %v154_v11 = vand.u32 2147483647, %v129_v10  ;;  %v128_v12 = vld [vmem:[#allocation2] sm:$0xff]  ;;  %v131_v13 = vmul.f32 %v129_v10, %v129_v10 }
  0xfe   :  { %v130_v14 = vmul.f32 %v128_v12, %v128_v12  ;;  %v153_v19 = vand.u32 2147483647, %v128_v12 }
  0xff   :  { %v158_v15 = vsel %vm31_vm0, %v154_v11, 0.0  ;;  %v133_v16 = vsel %vm31_vm0, %v131_v13, 0.0 }
 0x100   :  { %159 = vadd.xlane.f32.xlu1 %v158_v15  ;;  %v132_v17 = vsel %vm31_vm0, %v130_v14, 0.0  ;;  %v155_v20 = vsel %vm31_vm0, %v153_v19, 0.0 }
 0x101   :  { %v134_v18 = vadd.f32 %v133_v16, %v132_v17 }
 0x103   :  { %135 = vadd.xlane.f32.xlu0 %v134_v18 }
 0x107   :  { %156 = vadd.xlane.f32.xlu0 %v155_v20 }
 0x18d   :  { %v160_v34 = vpop.xlane.xlu1 %159 }
 0x190   :  { %v136_v21 = vpop.xlane.xlu0 %135 }
 0x191   :  { %v137_v22 = vrot.slane %v136_v21, 4 }
 0x193   :  { %v138_v23 = vadd.f32 %v137_v22, %v136_v21 }
 0x194   :  { %v157_v33 = vpop.xlane.xlu0 %156 }
 0x195   :  { %v139_v24 = vrot.slane %v138_v23, 2  ;;  %v161_v35 = vmax.f32 %v157_v33, %v160_v34 }
 0x197   :  { %v140_v25 = vadd.f32 %v139_v24, %v138_v23  ;;  %v162_v36 = vrot.slane %v161_v35, 4 }
 0x199   :  { %v141_v26 = vrot.slane %v140_v25, 1  ;;  %v163_v37 = vmax.f32 %v161_v35, %v162_v36 }
 0x19b   :  { %v142_v27 = vadd.f32 %v141_v26, %v140_v25  ;;  %v164_v39 = vrot.slane %v163_v37, 2 }
 0x19d   :  { %4925 = vpush %v142_v27  ;;  %v165_v40 = vmax.f32 %v163_v37, %v164_v39 }
 0x19f   :  { %v166_v42 = vrot.slane %v165_v40, 1 }
 0x1a1   :  { %v167_v47 = vmax.f32 %v165_v40, %v166_v42 }
 0x1ce   :  { %s4926_s0 = spop %4925 }
 0x1cf   :  { %v144_v38 = vstv %s4926_s0 }
 0x1d0   :  { %4941 = vrsqrt.f32 %v144_v38  ;;  %vm147_vm5 = vcmp.eq.f32.partialorder %v144_v38, inf  ;;  %v150_v44 = vand.u32 2147483648, %v144_v38  ;;  %vm149_vm6 = vcmp.eq.f32.partialorder %v144_v38, 0.0 }
 0x1da   :  { %v4942_v41 = vpop.eup %4941 }
 0x1db   :  { %v146_v43 = vmul.f32 %v4942_v41, %v144_v38 }
 0x1dd   :  { %v148_v45 = vsel %vm147_vm5, %v144_v38, %v146_v43 }
 0x1de   :  { %v151_v46 = vsel %vm149_vm6, %v150_v44, %v148_v45 }
 0x1df   :  { %4927 = vpush %v151_v46 }
 0x1e0   :  { %4929 = vpush %v167_v47 }
 0x210   :  { %s4928_s23 = spop %4927 }
 0x211   :  { %s4930_s24 = spop %4929 }
 0x212   :  { %s169_s25 = smin.f32 %s4930_s24, %s4928_s23 }
 0x213   :  { %s170_s26 = sadd.f32 1e-12, %s169_s25 }
 0x215   :  { %v5032_v48 = vstv %s170_s26 }
 0x216   :  { %4943 = vrcp.f32 %v5032_v48  ;;  %vm4076_vm8 = vcmp.eq.f32.partialorder %v5032_v48, inf  ;;  %vm4078_vm9 = vcmp.eq.f32.partialorder %v5032_v48, 0.0 }
 0x217   :  { %4945 = vrsqrt.f32 %v5032_v48 }
 0x220   :  { %v4944_v49 = vpop.eup %4943 }
 0x221   :  { %v186_v50 = vmul.f32 %v4944_v49, %v128_v12  ;;  %v187_v51 = vmul.f32 %v4944_v49, %v129_v10 }
 0x223   :  { %v4737_v52 = vpack.c.bf16 %v187_v51, %v186_v50 }
 0x225   :  { %4738 = vmatprep.subr.bf16.mxu1 %v4737_v52 }
 0x226   :  { %4740 = vmatpush3.bf16.msra.mxu1 %v4737_v52 }
 0x229   :  { %4407 = vmatmul.mubr.msk.f32.vlgmr.msra.gmra.mrb[0].mxu1 %vm31_vm0, %v5037_v53 }
 0x22a   :  { %4413 = vmatprep.mubr.msk.f32.mxu1 %vm31_vm0, %v186_v50 }
 0x2fc   :  { %v4408_v57 = vpop.f32.mrb[0].mxu1 }
 0x2fd   :  { %v270_v58 = vsub.f32 %v5045_v55, %v4408_v57  ;;  %v260_v59 = vpop.f32.mrb[1].mxu1 }
 0x2fe   :  { %v269_v60 = vsub.f32 %v5048_v56, %v260_v59 }
 0x2ff   :  { %v272_v61 = vmul.f32 0.5, %v270_v58 }
 0x300   :  { %v271_v62 = vmul.f32 0.5, %v269_v60 }
 0x302   :  { %v4741_v63 = vpack.c.bf16 %v272_v61, %v271_v62  ;;  %4420 = vmatprep.mubr.msk.f32.mxu0 %vm31_vm0, %v271_v62 }
 0x303   :  { %4421 = vmatmul.mubr.msk.f32.vlgmr.msra.gmra.mrb[2].mxu0 %vm31_vm0, %v272_v61 }
 0x304   :  { %4742 = vmatprep.subr.bf16.mxu1 %v4741_v63 }
 0x305   :  { %4744 = vmatpush3.bf16.msra.mxu1 %v4741_v63 }
 0x308   :  { %4414 = vmatmul.mubr.msk.f32.vlgmr.msra.gmra.mrb[2].mxu1 %vm31_vm0, %v187_v51 }
 0x3d6   :  { %v4422_v0 = vpop.f32.mrb[2].mxu0 }
 0x3d7   :  { %v426_v1 = vpop.f32.mrb[3].mxu0 }
 0x3d8   :  { %v4757_v2 = vpack.c.bf16 %v4422_v0, %v426_v1  ;;  %4427 = vmatprep.mubr.msk.f32.mxu1 %vm31_vm0, %v426_v1 }
 0x3db   :  { %v4415_v3 = vpop.f32.mrb[2].mxu1 }
 0x3dc   :  { %v345_v4 = vpop.f32.mrb[3].mxu1 }
 0x3dd   :  { %v4749_v5 = vpack.c.bf16 %v4415_v3, %v345_v4  ;;  %4434 = vmatprep.mubr.msk.f32.mxu0 %vm31_vm0, %v345_v4 }
 0x3df   :  { %4750 = vmatprep.subr.bf16.mxu1 %v4749_v5 }
 0x3e0   :  { %4752 = vmatpush3.bf16.msra.mxu1 %v4749_v5 }
 0x3e1   :  { %4758 = vmatprep.subr.bf16.mxu1 %v4757_v2 }
 0x3e3   :  { %4428 = vmatmul.mubr.msk.f32.vlgmr.msra.gmra.mrb[4].mxu1 %vm31_vm0, %v4422_v0 }
 0x3e4   :  { %4760 = vmatpush3.bf16.msra.mxu1 %v4757_v2 }
 0x4b6   :  { %v4429_v6 = vpop.f32.mrb[4].mxu1 }
 0x4b7   :  { %v517_v7 = vsub.f32 %v5045_v55, %v4429_v6  ;;  %v507_v8 = vpop.f32.mrb[5].mxu1 }
 0x4b8   :  { %v516_v9 = vsub.f32 %v5048_v56, %v507_v8 }
 0x4b9   :  { %v519_v10 = vmul.f32 0.5, %v517_v7 }
 0x4ba   :  { %v518_v11 = vmul.f32 0.5, %v516_v9 }
 0x4bc   :  { %v4753_v12 = vpack.c.bf16 %v519_v10, %v518_v11  ;;  %4441 = vmatprep.mubr.msk.f32.mxu1 %vm31_vm0, %v518_v11 }
 0x4bd   :  { %4442 = vmatmul.mubr.msk.f32.vlgmr.msra.gmra.mrb[6].mxu1 %vm31_vm0, %v519_v10 }
 0x4be   :  { %4754 = vmatprep.subr.bf16.mxu0 %v4753_v12 }
 0x4bf   :  { %4756 = vmatpush3.bf16.msra.mxu0 %v4753_v12 }
 0x4c2   :  { %4435 = vmatmul.mubr.msk.f32.vlgmr.msra.gmra.mrb[4].mxu0 %vm31_vm0, %v4415_v3 }
 0x590   :  { %v4443_v13 = vpop.f32.mrb[6].mxu1 }
 0x591   :  { %v673_v14 = vpop.f32.mrb[7].mxu1 }
 0x592   :  { %v4769_v15 = vpack.c.bf16 %v4443_v13, %v673_v14  ;;  %4448 = vmatprep.mubr.msk.f32.mxu0 %vm31_vm0, %v673_v14 }
 0x595   :  { %v4436_v16 = vpop.f32.mrb[4].mxu0 }
 0x596   :  { %v592_v17 = vpop.f32.mrb[5].mxu0 }
 0x597   :  { %v4761_v18 = vpack.c.bf16 %v4436_v16, %v592_v17  ;;  %4455 = vmatprep.mubr.msk.f32.mxu1 %vm31_vm0, %v592_v17 }
 0x599   :  { %4762 = vmatprep.subr.bf16.mxu0 %v4761_v18 }
 0x59a   :  { %4764 = vmatpush3.bf16.msra.mxu0 %v4761_v18 }
 0x59b   :  { %4770 = vmatprep.subr.bf16.mxu0 %v4769_v15 }
 0x59d   :  { %4449 = vmatmul.mubr.msk.f32.vlgmr.msra.gmra.mrb[6].mxu0 %vm31_vm0, %v4443_v13 }
 0x59e   :  { %4772 = vmatpush3.bf16.msra.mxu0 %v4769_v15 }
 0x670   :  { %v4450_v19 = vpop.f32.mrb[6].mxu0 }
 0x671   :  { %v764_v20 = vsub.f32 %v5045_v55, %v4450_v19  ;;  %v754_v21 = vpop.f32.mrb[7].mxu0 }
 0x672   :  { %v763_v22 = vsub.f32 %v5048_v56, %v754_v21 }
 0x673   :  { %v766_v23 = vmul.f32 0.5, %v764_v20 }
 0x674   :  { %v765_v24 = vmul.f32 0.5, %v763_v22 }
 0x676   :  { %v4765_v25 = vpack.c.bf16 %v766_v23, %v765_v24  ;;  %4462 = vmatprep.mubr.msk.f32.mxu0 %vm31_vm0, %v765_v24 }
 0x677   :  { %4463 = vmatmul.mubr.msk.f32.vlgmr.msra.gmra.mrb[8].mxu0 %vm31_vm0, %v766_v23 }
 0x678   :  { %4766 = vmatprep.subr.bf16.mxu1 %v4765_v25 }
 0x679   :  { %4768 = vmatpush3.bf16.msra.mxu1 %v4765_v25 }
 0x67c   :  { %4456 = vmatmul.mubr.msk.f32.vlgmr.msra.gmra.mrb[8].mxu1 %vm31_vm0, %v4436_v16 }
 0x74a   :  { %v4464_v26 = vpop.f32.mrb[8].mxu0 }
 0x74b   :  { %v920_v27 = vpop.f32.mrb[9].mxu0 }
 0x74c   :  { %v4781_v28 = vpack.c.bf16 %v4464_v26, %v920_v27  ;;  %4469 = vmatprep.mubr.msk.f32.mxu1 %vm31_vm0, %v920_v27 }
 0x74f   :  { %v4457_v29 = vpop.f32.mrb[8].mxu1 }
 0x750   :  { %v839_v30 = vpop.f32.mrb[9].mxu1 }
 0x751   :  { %v4773_v31 = vpack.c.bf16 %v4457_v29, %v839_v30  ;;  %4476 = vmatprep.mubr.msk.f32.mxu0 %vm31_vm0, %v839_v30 }
 0x753   :  { %4774 = vmatprep.subr.bf16.mxu1 %v4773_v31 }
 0x754   :  { %4776 = vmatpush3.bf16.msra.mxu1 %v4773_v31 }
 0x755   :  { %4782 = vmatprep.subr.bf16.mxu1 %v4781_v28 }
 0x757   :  { %4470 = vmatmul.mubr.msk.f32.vlgmr.msra.gmra.mrb[10].mxu1 %vm31_vm0, %v4464_v26 }
 0x758   :  { %4784 = vmatpush3.bf16.msra.mxu1 %v4781_v28 }
 0x82a   :  { %v4471_v33 = vpop.f32.mrb[10].mxu1 }
 0x82b   :  { %v1011_v34 = vsub.f32 %v5045_v55, %v4471_v33  ;;  %v1001_v35 = vpop.f32.mrb[11].mxu1 }
 0x82c   :  { %v1010_v36 = vsub.f32 %v5048_v56, %v1001_v35 }
 0x82d   :  { %v1013_v37 = vmul.f32 0.5, %v1011_v34 }
 0x82e   :  { %v1012_v38 = vmul.f32 0.5, %v1010_v36 }
 0x830   :  { %v4777_v39 = vpack.c.bf16 %v1013_v37, %v1012_v38  ;;  %4483 = vmatprep.mubr.msk.f32.mxu1 %vm31_vm0, %v1012_v38 }
 0x831   :  { %4484 = vmatmul.mubr.msk.f32.vlgmr.msra.gmra.mrb[12].mxu1 %vm31_vm0, %v1013_v37 }
 0x832   :  { %4778 = vmatprep.subr.bf16.mxu0 %v4777_v39 }
 0x833   :  { %4780 = vmatpush3.bf16.msra.mxu0 %v4777_v39 }
 0x836   :  { %4477 = vmatmul.mubr.msk.f32.vlgmr.msra.gmra.mrb[10].mxu0 %vm31_vm0, %v4457_v29 }
 0x904   :  { %v4485_v40 = vpop.f32.mrb[12].mxu1 }
 0x905   :  { %v1167_v41 = vpop.f32.mrb[13].mxu1 }
 0x906   :  { %v4793_v42 = vpack.c.bf16 %v4485_v40, %v1167_v41  ;;  %4490 = vmatprep.mubr.msk.f32.mxu0 %vm31_vm0, %v1167_v41 }
 0x909   :  { %v4478_v43 = vpop.f32.mrb[10].mxu0 }
 0x90a   :  { %v1086_v44 = vpop.f32.mrb[11].mxu0 }
 0x90b   :  { %v4785_v45 = vpack.c.bf16 %v4478_v43, %v1086_v44  ;;  %4497 = vmatprep.mubr.msk.f32.mxu1 %vm31_vm0, %v1086_v44 }
 0x90d   :  { %4786 = vmatprep.subr.bf16.mxu0 %v4785_v45 }
 0x90e   :  { %4788 = vmatpush3.bf16.msra.mxu0 %v4785_v45 }
 0x90f   :  { %4794 = vmatprep.subr.bf16.mxu0 %v4793_v42 }
 0x911   :  { %4491 = vmatmul.mubr.msk.f32.vlgmr.msra.gmra.mrb[12].mxu0 %vm31_vm0, %v4485_v40 }
 0x912   :  { %4796 = vmatpush3.bf16.msra.mxu0 %v4793_v42 }
 0x9e4   :  { %v4492_v46 = vpop.f32.mrb[12].mxu0 }
 0x9e5   :  { %v1258_v47 = vsub.f32 %v5045_v55, %v4492_v46  ;;  %v1248_v49 = vpop.f32.mrb[13].mxu0 }
 0x9e6   :  { %v1257_v50 = vsub.f32 %v5048_v56, %v1248_v49 }
 0x9e7   :  { %v1260_v51 = vmul.f32 0.5, %v1258_v47 }
 0x9e8   :  { %v1259_v52 = vmul.f32 0.5, %v1257_v50 }
 0x9ea   :  { %v4789_v54 = vpack.c.bf16 %v1260_v51, %v1259_v52  ;;  %4504 = vmatprep.mubr.msk.f32.mxu0 %vm31_vm0, %v1259_v52 }
 0x9eb   :  { %4505 = vmatmul.mubr.msk.f32.vlgmr.msra.gmra.mrb[14].mxu0 %vm31_vm0, %v1260_v51 }
 0x9ec   :  { %4790 = vmatprep.subr.bf16.mxu1 %v4789_v54 }
 0x9ed   :  { %4792 = vmatpush3.bf16.msra.mxu1 %v4789_v54 }
 0x9f0   :  { %4498 = vmatmul.mubr.msk.f32.vlgmr.msra.gmra.mrb[14].mxu1 %vm31_vm0, %v4478_v43 }
 0xabe   :  { %v4506_v57 = vpop.f32.mrb[14].mxu0 }
 0xabf   :  { %v1414_v58 = vpop.f32.mrb[15].mxu0 }
 0xac0   :  { %v4805_v59 = vpack.c.bf16 %v4506_v57, %v1414_v58  ;;  %4511 = vmatprep.mubr.msk.f32.mxu1 %vm31_vm0, %v1414_v58 }
 0xac3   :  { %v4499_v60 = vpop.f32.mrb[14].mxu1 }
 0xac4   :  { %v1333_v61 = vpop.f32.mrb[15].mxu1 }
 0xac5   :  { %v4797_v62 = vpack.c.bf16 %v4499_v60, %v1333_v61  ;;  %4518 = vmatprep.mubr.msk.f32.mxu0 %vm31_vm0, %v1333_v61 }
 0xac7   :  { %4798 = vmatprep.subr.bf16.mxu1 %v4797_v62 }
 0xac8   :  { %4800 = vmatpush3.bf16.msra.mxu1 %v4797_v62 }
 0xac9   :  { %4806 = vmatprep.subr.bf16.mxu1 %v4805_v59 }
 0xacb   :  { %4512 = vmatmul.mubr.msk.f32.vlgmr.msra.gmra.mrb[16].mxu1 %vm31_vm0, %v4506_v57 }
 0xacc   :  { %4808 = vmatpush3.bf16.msra.mxu1 %v4805_v59 }
 0xb9e   :  { %v4513_v63 = vpop.f32.mrb[16].mxu1 }
 0xb9f   :  { %v1505_v0 = vsub.f32 %v5045_v55, %v4513_v63  ;;  %v1495_v1 = vpop.f32.mrb[17].mxu1 }
 0xba0   :  { %v1504_v2 = vsub.f32 %v5048_v56, %v1495_v1 }
 0xba1   :  { %v1507_v3 = vmul.f32 0.5, %v1505_v0 }
 0xba2   :  { %v1506_v4 = vmul.f32 0.5, %v1504_v2 }
 0xba4   :  { %v4801_v5 = vpack.c.bf16 %v1507_v3, %v1506_v4  ;;  %4525 = vmatprep.mubr.msk.f32.mxu1 %vm31_vm0, %v1506_v4 }
 0xba5   :  { %4526 = vmatmul.mubr.msk.f32.vlgmr.msra.gmra.mrb[18].mxu1 %vm31_vm0, %v1507_v3 }
 0xba6   :  { %4802 = vmatprep.subr.bf16.mxu0 %v4801_v5 }
 0xba7   :  { %4804 = vmatpush3.bf16.msra.mxu0 %v4801_v5 }
 0xbaa   :  { %4519 = vmatmul.mubr.msk.f32.vlgmr.msra.gmra.mrb[16].mxu0 %vm31_vm0, %v4499_v60 }
 0xc78   :  { %v4527_v6 = vpop.f32.mrb[18].mxu1 }
 0xc79   :  { %v1661_v7 = vpop.f32.mrb[19].mxu1 }
 0xc7a   :  { %v4817_v8 = vpack.c.bf16 %v4527_v6, %v1661_v7  ;;  %4532 = vmatprep.mubr.msk.f32.mxu0 %vm31_vm0, %v1661_v7 }
 0xc7d   :  { %v4520_v9 = vpop.f32.mrb[16].mxu0 }
 0xc7e   :  { %v1580_v10 = vpop.f32.mrb[17].mxu0 }
 0xc7f   :  { %v4809_v11 = vpack.c.bf16 %v4520_v9, %v1580_v10  ;;  %4539 = vmatprep.mubr.msk.f32.mxu1 %vm31_vm0, %v1580_v10 }
 0xc81   :  { %4810 = vmatprep.subr.bf16.mxu0 %v4809_v11 }
 0xc82   :  { %4812 = vmatpush3.bf16.msra.mxu0 %v4809_v11 }
 0xc83   :  { %4818 = vmatprep.subr.bf16.mxu0 %v4817_v8 }
 0xc85   :  { %4533 = vmatmul.mubr.msk.f32.vlgmr.msra.gmra.mrb[18].mxu0 %vm31_vm0, %v4527_v6 }
 0xc86   :  { %4820 = vmatpush3.bf16.msra.mxu0 %v4817_v8 }
 0xd58   :  { %v4534_v12 = vpop.f32.mrb[18].mxu0 }
 0xd59   :  { %v1752_v13 = vsub.f32 %v5045_v55, %v4534_v12  ;;  %v1742_v14 = vpop.f32.mrb[19].mxu0 }
 0xd5a   :  { %v1751_v15 = vsub.f32 %v5048_v56, %v1742_v14 }
 0xd5b   :  { %v1754_v16 = vmul.f32 0.5, %v1752_v13 }
 0xd5c   :  { %v1753_v17 = vmul.f32 0.5, %v1751_v15 }
 0xd5e   :  { %v4813_v18 = vpack.c.bf16 %v1754_v16, %v1753_v17  ;;  %4546 = vmatprep.mubr.msk.f32.mxu0 %vm31_vm0, %v1753_v17 }
 0xd5f   :  { %4547 = vmatmul.mubr.msk.f32.vlgmr.msra.gmra.mrb[20].mxu0 %vm31_vm0, %v1754_v16 }
 0xd60   :  { %4814 = vmatprep.subr.bf16.mxu1 %v4813_v18 }
 0xd61   :  { %4816 = vmatpush3.bf16.msra.mxu1 %v4813_v18 }
 0xd64   :  { %4540 = vmatmul.mubr.msk.f32.vlgmr.msra.gmra.mrb[20].mxu1 %vm31_vm0, %v4520_v9 }
 0xe32   :  { %v4548_v19 = vpop.f32.mrb[20].mxu0 }
 0xe33   :  { %v1908_v20 = vpop.f32.mrb[21].mxu0 }
 0xe34   :  { %v4829_v21 = vpack.c.bf16 %v4548_v19, %v1908_v20  ;;  %4553 = vmatprep.mubr.msk.f32.mxu1 %vm31_vm0, %v1908_v20 }
 0xe37   :  { %v4541_v22 = vpop.f32.mrb[20].mxu1 }
 0xe38   :  { %v1827_v23 = vpop.f32.mrb[21].mxu1 }
 0xe39   :  { %v4821_v24 = vpack.c.bf16 %v4541_v22, %v1827_v23  ;;  %4560 = vmatprep.mubr.msk.f32.mxu0 %vm31_vm0, %v1827_v23 }
 0xe3b   :  { %4822 = vmatprep.subr.bf16.mxu1 %v4821_v24 }
 0xe3c   :  { %4824 = vmatpush3.bf16.msra.mxu1 %v4821_v24 }
 0xe3d   :  { %4830 = vmatprep.subr.bf16.mxu1 %v4829_v21 }
 0xe3f   :  { %4554 = vmatmul.mubr.msk.f32.vlgmr.msra.gmra.mrb[22].mxu1 %vm31_vm0, %v4548_v19 }
 0xe40   :  { %4832 = vmatpush3.bf16.msra.mxu1 %v4829_v21 }
 0xf12   :  { %v4555_v25 = vpop.f32.mrb[22].mxu1 }
 0xf13   :  { %v1999_v26 = vsub.f32 %v5045_v55, %v4555_v25  ;;  %v1989_v27 = vpop.f32.mrb[23].mxu1 }
 0xf14   :  { %v1998_v28 = vsub.f32 %v5048_v56, %v1989_v27 }
 0xf15   :  { %v2001_v29 = vmul.f32 0.5, %v1999_v26 }
 0xf16   :  { %v2000_v30 = vmul.f32 0.5, %v1998_v28 }
 0xf18   :  { %v4825_v31 = vpack.c.bf16 %v2001_v29, %v2000_v30  ;;  %4567 = vmatprep.mubr.msk.f32.mxu1 %vm31_vm0, %v2000_v30 }
 0xf19   :  { %4568 = vmatmul.mubr.msk.f32.vlgmr.msra.gmra.mrb[24].mxu1 %vm31_vm0, %v2001_v29 }
 0xf1a   :  { %4826 = vmatprep.subr.bf16.mxu0 %v4825_v31 }
 0xf1b   :  { %4828 = vmatpush3.bf16.msra.mxu0 %v4825_v31 }
 0xf1e   :  { %4561 = vmatmul.mubr.msk.f32.vlgmr.msra.gmra.mrb[22].mxu0 %vm31_vm0, %v4541_v22 }
 0xfec   :  { %v4569_v33 = vpop.f32.mrb[24].mxu1 }
 0xfed   :  { %v2155_v34 = vpop.f32.mrb[25].mxu1 }
 0xfee   :  { %v4841_v35 = vpack.c.bf16 %v4569_v33, %v2155_v34  ;;  %4574 = vmatprep.mubr.msk.f32.mxu0 %vm31_vm0, %v2155_v34 }
 0xff1   :  { %v4562_v36 = vpop.f32.mrb[22].mxu0 }
 0xff2   :  { %v2074_v37 = vpop.f32.mrb[23].mxu0 }
 0xff3   :  { %v4833_v38 = vpack.c.bf16 %v4562_v36, %v2074_v37  ;;  %4581 = vmatprep.mubr.msk.f32.mxu1 %vm31_vm0, %v2074_v37 }
 0xff5   :  { %4834 = vmatprep.subr.bf16.mxu0 %v4833_v38 }
 0xff6   :  { %4836 = vmatpush3.bf16.msra.mxu0 %v4833_v38 }
 0xff7   :  { %4842 = vmatprep.subr.bf16.mxu0 %v4841_v35 }
 0xff9   :  { %4575 = vmatmul.mubr.msk.f32.vlgmr.msra.gmra.mrb[24].mxu0 %vm31_vm0, %v4569_v33 }
 0xffa   :  { %4844 = vmatpush3.bf16.msra.mxu0 %v4841_v35 }
0x10cc   :  { %v4576_v39 = vpop.f32.mrb[24].mxu0 }
0x10cd   :  { %v2246_v40 = vsub.f32 %v5045_v55, %v4576_v39  ;;  %v2236_v41 = vpop.f32.mrb[25].mxu0 }
0x10ce   :  { %v2245_v42 = vsub.f32 %v5048_v56, %v2236_v41 }
0x10cf   :  { %v2248_v43 = vmul.f32 0.5, %v2246_v40 }
0x10d0   :  { %v2247_v44 = vmul.f32 0.5, %v2245_v42 }
0x10d2   :  { %v4837_v45 = vpack.c.bf16 %v2248_v43, %v2247_v44  ;;  %4588 = vmatprep.mubr.msk.f32.mxu0 %vm31_vm0, %v2247_v44 }
0x10d3   :  { %4589 = vmatmul.mubr.msk.f32.vlgmr.msra.gmra.mrb[26].mxu0 %vm31_vm0, %v2248_v43 }
0x10d4   :  { %4838 = vmatprep.subr.bf16.mxu1 %v4837_v45 }
0x10d5   :  { %4840 = vmatpush3.bf16.msra.mxu1 %v4837_v45 }
0x10d8   :  { %4582 = vmatmul.mubr.msk.f32.vlgmr.msra.gmra.mrb[26].mxu1 %vm31_vm0, %v4562_v36 }
0x11a6   :  { %v4590_v46 = vpop.f32.mrb[26].mxu0 }
0x11a7   :  { %v2402_v47 = vpop.f32.mrb[27].mxu0 }
0x11a8   :  { %v4853_v49 = vpack.c.bf16 %v4590_v46, %v2402_v47  ;;  %4595 = vmatprep.mubr.msk.f32.mxu1 %vm31_vm0, %v2402_v47 }
0x11ab   :  { %v4583_v50 = vpop.f32.mrb[26].mxu1 }
0x11ac   :  { %v2321_v51 = vpop.f32.mrb[27].mxu1 }
0x11ad   :  { %v4845_v52 = vpack.c.bf16 %v4583_v50, %v2321_v51  ;;  %4602 = vmatprep.mubr.msk.f32.mxu0 %vm31_vm0, %v2321_v51 }
0x11af   :  { %4846 = vmatprep.subr.bf16.mxu1 %v4845_v52 }
0x11b0   :  { %4848 = vmatpush3.bf16.msra.mxu1 %v4845_v52 }
0x11b1   :  { %4854 = vmatprep.subr.bf16.mxu1 %v4853_v49 }
0x11b3   :  { %4596 = vmatmul.mubr.msk.f32.vlgmr.msra.gmra.mrb[28].mxu1 %vm31_vm0, %v4590_v46 }
0x11b4   :  { %4856 = vmatpush3.bf16.msra.mxu1 %v4853_v49 }
0x1286   :  { %v4597_v54 = vpop.f32.mrb[28].mxu1 }
0x1287   :  { %v2493_v57 = vsub.f32 %v5045_v55, %v4597_v54  ;;  %v2483_v58 = vpop.f32.mrb[29].mxu1 }
0x1288   :  { %v2492_v59 = vsub.f32 %v5048_v56, %v2483_v58 }
0x1289   :  { %v2495_v60 = vmul.f32 0.5, %v2493_v57 }
0x128a   :  { %v2494_v61 = vmul.f32 0.5, %v2492_v59 }
0x128c   :  { %v4849_v62 = vpack.c.bf16 %v2495_v60, %v2494_v61  ;;  %4609 = vmatprep.mubr.msk.f32.mxu1 %vm31_vm0, %v2494_v61 }
0x128d   :  { %4610 = vmatmul.mubr.msk.f32.vlgmr.msra.gmra.mrb[30].mxu1 %vm31_vm0, %v2495_v60 }
0x128e   :  { %4850 = vmatprep.subr.bf16.mxu0 %v4849_v62 }
0x128f   :  { %4852 = vmatpush3.bf16.msra.mxu0 %v4849_v62 }
0x1292   :  { %4603 = vmatmul.mubr.msk.f32.vlgmr.msra.gmra.mrb[28].mxu0 %vm31_vm0, %v4583_v50 }
0x1360   :  { %v4611_v63 = vpop.f32.mrb[30].mxu1 }
0x1361   :  { %v2649_v0 = vpop.f32.mrb[31].mxu1 }
0x1362   :  { %v4865_v1 = vpack.c.bf16 %v4611_v63, %v2649_v0  ;;  %4616 = vmatprep.mubr.msk.f32.mxu0 %vm31_vm0, %v2649_v0 }
0x1365   :  { %v4604_v2 = vpop.f32.mrb[28].mxu0 }
0x1366   :  { %v2568_v3 = vpop.f32.mrb[29].mxu0 }
0x1367   :  { %v4857_v4 = vpack.c.bf16 %v4604_v2, %v2568_v3  ;;  %4623 = vmatprep.mubr.msk.f32.mxu1 %vm31_vm0, %v2568_v3 }
0x1369   :  { %4858 = vmatprep.subr.bf16.mxu0 %v4857_v4 }
0x136a   :  { %4860 = vmatpush3.bf16.msra.mxu0 %v4857_v4 }
0x136b   :  { %4866 = vmatprep.subr.bf16.mxu0 %v4865_v1 }
0x136d   :  { %4617 = vmatmul.mubr.msk.f32.vlgmr.msra.gmra.mrb[30].mxu0 %vm31_vm0, %v4611_v63 }
0x136e   :  { %4868 = vmatpush3.bf16.msra.mxu0 %v4865_v1 }
0x1440   :  { %v4618_v5 = vpop.f32.mrb[30].mxu0 }
0x1441   :  { %v2740_v6 = vsub.f32 %v5045_v55, %v4618_v5  ;;  %v2730_v7 = vpop.f32.mrb[31].mxu0 }
0x1442   :  { %v2739_v8 = vsub.f32 %v5048_v56, %v2730_v7 }
0x1443   :  { %v2742_v9 = vmul.f32 0.5, %v2740_v6 }
0x1444   :  { %v2741_v10 = vmul.f32 0.5, %v2739_v8 }
0x1446   :  { %v4861_v11 = vpack.c.bf16 %v2742_v9, %v2741_v10  ;;  %4630 = vmatprep.mubr.msk.f32.mxu0 %vm31_vm0, %v2741_v10 }
0x1447   :  { %4631 = vmatmul.mubr.msk.f32.vlgmr.msra.gmra.mrb[32].mxu0 %vm31_vm0, %v2742_v9 }
0x1448   :  { %4862 = vmatprep.subr.bf16.mxu1 %v4861_v11 }
0x1449   :  { %4864 = vmatpush3.bf16.msra.mxu1 %v4861_v11 }
0x144c   :  { %4624 = vmatmul.mubr.msk.f32.vlgmr.msra.gmra.mrb[32].mxu1 %vm31_vm0, %v4604_v2 }
0x151a   :  { %v4632_v12 = vpop.f32.mrb[32].mxu0 }
0x151b   :  { %v2896_v13 = vpop.f32.mrb[33].mxu0 }
0x151c   :  { %v4877_v14 = vpack.c.bf16 %v4632_v12, %v2896_v13  ;;  %4637 = vmatprep.mubr.msk.f32.mxu1 %vm31_vm0, %v2896_v13 }
0x151f   :  { %v4625_v15 = vpop.f32.mrb[32].mxu1 }
0x1520   :  { %v2815_v16 = vpop.f32.mrb[33].mxu1 }
0x1521   :  { %v4869_v17 = vpack.c.bf16 %v4625_v15, %v2815_v16  ;;  %4644 = vmatprep.mubr.msk.f32.mxu0 %vm31_vm0, %v2815_v16 }
0x1523   :  { %4870 = vmatprep.subr.bf16.mxu1 %v4869_v17 }
0x1524   :  { %4872 = vmatpush3.bf16.msra.mxu1 %v4869_v17 }
0x1525   :  { %4878 = vmatprep.subr.bf16.mxu1 %v4877_v14 }
0x1527   :  { %4638 = vmatmul.mubr.msk.f32.vlgmr.msra.gmra.mrb[34].mxu1 %vm31_vm0, %v4632_v12 }
0x1528   :  { %4880 = vmatpush3.bf16.msra.mxu1 %v4877_v14 }
0x15fa   :  { %v4639_v18 = vpop.f32.mrb[34].mxu1 }
0x15fb   :  { %v2987_v19 = vsub.f32 %v5045_v55, %v4639_v18  ;;  %v2977_v20 = vpop.f32.mrb[35].mxu1 }
0x15fc   :  { %v2986_v21 = vsub.f32 %v5048_v56, %v2977_v20 }
0x15fd   :  { %v2989_v22 = vmul.f32 0.5, %v2987_v19 }
0x15fe   :  { %v2988_v23 = vmul.f32 0.5, %v2986_v21 }
0x1600   :  { %v4873_v24 = vpack.c.bf16 %v2989_v22, %v2988_v23  ;;  %4651 = vmatprep.mubr.msk.f32.mxu1 %vm31_vm0, %v2988_v23 }
0x1601   :  { %4652 = vmatmul.mubr.msk.f32.vlgmr.msra.gmra.mrb[36].mxu1 %vm31_vm0, %v2989_v22 }
0x1602   :  { %4874 = vmatprep.subr.bf16.mxu0 %v4873_v24 }
0x1603   :  { %4876 = vmatpush3.bf16.msra.mxu0 %v4873_v24  ;;  %v4946_v24 = vpop.eup %4945 }
0x1606   :  { %4645 = vmatmul.mubr.msk.f32.vlgmr.msra.gmra.mrb[34].mxu0 %vm31_vm0, %v4625_v15 }
0x16d4   :  { %v4653_v25 = vpop.f32.mrb[36].mxu1 }
0x16d5   :  { %v3143_v26 = vpop.f32.mrb[37].mxu1 }
0x16d6   :  { %v4889_v27 = vpack.c.bf16 %v4653_v25, %v3143_v26  ;;  %4658 = vmatprep.mubr.msk.f32.mxu0 %vm31_vm0, %v3143_v26 }
0x16d9   :  { %v4646_v28 = vpop.f32.mrb[34].mxu0 }
0x16da   :  { %v3062_v29 = vpop.f32.mrb[35].mxu0 }
0x16db   :  { %v4881_v30 = vpack.c.bf16 %v4646_v28, %v3062_v29  ;;  %4665 = vmatprep.mubr.msk.f32.mxu1 %vm31_vm0, %v3062_v29 }
0x16dd   :  { %4882 = vmatprep.subr.bf16.mxu0 %v4881_v30 }
0x16de   :  { %4884 = vmatpush3.bf16.msra.mxu0 %v4881_v30  ;;  %v4079_v30 = vand.u32 2147483648, %v5032_v48 }
0x16df   :  { %4890 = vmatprep.subr.bf16.mxu0 %v4889_v27 }
0x16e1   :  { %4659 = vmatmul.mubr.msk.f32.vlgmr.msra.gmra.mrb[36].mxu0 %vm31_vm0, %v4653_v25 }
0x16e2   :  { %4892 = vmatpush3.bf16.msra.mxu0 %v4889_v27  ;;  %v4075_v27 = vmul.f32 %v4946_v24, %v5032_v48 }
0x17b4   :  { %v4660_v31 = vpop.f32.mrb[36].mxu0 }
0x17b5   :  { %v3234_v33 = vsub.f32 %v5045_v55, %v4660_v31  ;;  %v3224_v34 = vpop.f32.mrb[37].mxu0 }
0x17b6   :  { %v3233_v35 = vsub.f32 %v5048_v56, %v3224_v34 }
0x17b7   :  { %v3236_v36 = vmul.f32 0.5, %v3234_v33 }
0x17b8   :  { %v3235_v37 = vmul.f32 0.5, %v3233_v35 }
0x17ba   :  { %v4885_v38 = vpack.c.bf16 %v3236_v36, %v3235_v37  ;;  %4672 = vmatprep.mubr.msk.f32.mxu0 %vm31_vm0, %v3235_v37 }
0x17bb   :  { %4673 = vmatmul.mubr.msk.f32.vlgmr.msra.gmra.mrb[38].mxu0 %vm31_vm0, %v3236_v36 }
0x17bc   :  { %4886 = vmatprep.subr.bf16.mxu1 %v4885_v38 }
0x17bd   :  { %4888 = vmatpush3.bf16.msra.mxu1 %v4885_v38 }
0x17c0   :  { %4666 = vmatmul.mubr.msk.f32.vlgmr.msra.gmra.mrb[38].mxu1 %vm31_vm0, %v4646_v28 }
0x188e   :  { %v4674_v39 = vpop.f32.mrb[38].mxu0 }
0x188f   :  { %v3390_v40 = vpop.f32.mrb[39].mxu0 }
0x1890   :  { %v4901_v41 = vpack.c.bf16 %v4674_v39, %v3390_v40  ;;  %4679 = vmatprep.mubr.msk.f32.mxu1 %vm31_vm0, %v3390_v40 }
0x1893   :  { %v4667_v42 = vpop.f32.mrb[38].mxu1 }
0x1894   :  { %v3309_v43 = vpop.f32.mrb[39].mxu1 }
0x1895   :  { %v4893_v44 = vpack.c.bf16 %v4667_v42, %v3309_v43  ;;  %4686 = vmatprep.mubr.msk.f32.mxu0 %vm31_vm0, %v3309_v43 }
0x1897   :  { %4894 = vmatprep.subr.bf16.mxu1 %v4893_v44 }
0x1898   :  { %4896 = vmatpush3.bf16.msra.mxu1 %v4893_v44 }
0x1899   :  { %4902 = vmatprep.subr.bf16.mxu1 %v4901_v41 }
0x189b   :  { %4680 = vmatmul.mubr.msk.f32.vlgmr.msra.gmra.mrb[40].mxu1 %vm31_vm0, %v4674_v39 }
0x189c   :  { %4904 = vmatpush3.bf16.msra.mxu1 %v4901_v41 }
0x196e   :  { %v4681_v45 = vpop.f32.mrb[40].mxu1 }
0x196f   :  { %v3481_v46 = vsub.f32 %v5045_v55, %v4681_v45  ;;  %v3471_v47 = vpop.f32.mrb[41].mxu1 }
0x1970   :  { %v3480_v49 = vsub.f32 %v5048_v56, %v3471_v47 }
0x1971   :  { %v3483_v50 = vmul.f32 0.5, %v3481_v46 }
0x1972   :  { %v3482_v51 = vmul.f32 0.5, %v3480_v49 }
0x1974   :  { %v4897_v52 = vpack.c.bf16 %v3483_v50, %v3482_v51  ;;  %4693 = vmatprep.mubr.msk.f32.mxu1 %vm31_vm0, %v3482_v51 }
0x1975   :  { %4694 = vmatmul.mubr.msk.f32.vlgmr.msra.gmra.mrb[42].mxu1 %vm31_vm0, %v3483_v50 }
0x1976   :  { %4898 = vmatprep.subr.bf16.mxu0 %v4897_v52 }
0x1977   :  { %4900 = vmatpush3.bf16.msra.mxu0 %v4897_v52 }
0x197a   :  { %4687 = vmatmul.mubr.msk.f32.vlgmr.msra.gmra.mrb[40].mxu0 %vm31_vm0, %v4667_v42 }
0x1a48   :  { %v4695_v54 = vpop.f32.mrb[42].mxu1 }
0x1a49   :  { %v3637_v57 = vpop.f32.mrb[43].mxu1 }
0x1a4a   :  { %v4913_v58 = vpack.c.bf16 %v4695_v54, %v3637_v57  ;;  %4700 = vmatprep.mubr.msk.f32.mxu0 %vm31_vm0, %v3637_v57 }
0x1a4d   :  { %v4688_v59 = vpop.f32.mrb[40].mxu0 }
0x1a4e   :  { %v3556_v60 = vpop.f32.mrb[41].mxu0 }
0x1a4f   :  { %v4905_v61 = vpack.c.bf16 %v4688_v59, %v3556_v60  ;;  %4707 = vmatprep.mubr.msk.f32.mxu1 %vm31_vm0, %v3556_v60 }
0x1a51   :  { %4906 = vmatprep.subr.bf16.mxu0 %v4905_v61 }
0x1a52   :  { %4908 = vmatpush3.bf16.msra.mxu0 %v4905_v61 }
0x1a53   :  { %4914 = vmatprep.subr.bf16.mxu0 %v4913_v58 }
0x1a55   :  { %4701 = vmatmul.mubr.msk.f32.vlgmr.msra.gmra.mrb[42].mxu0 %vm31_vm0, %v4695_v54 }
0x1a56   :  { %4916 = vmatpush3.bf16.msra.mxu0 %v4913_v58 }
0x1b28   :  { %v4702_v62 = vpop.f32.mrb[42].mxu0 }
0x1b29   :  { %v3728_v63 = vsub.f32 %v5045_v55, %v4702_v62  ;;  %v3718_v0 = vpop.f32.mrb[43].mxu0 }
0x1b2a   :  { %v3727_v1 = vsub.f32 %v5048_v56, %v3718_v0 }
0x1b2b   :  { %v3730_v2 = vmul.f32 0.5, %v3728_v63 }
0x1b2c   :  { %v3729_v3 = vmul.f32 0.5, %v3727_v1 }
0x1b2e   :  { %v4909_v4 = vpack.c.bf16 %v3730_v2, %v3729_v3  ;;  %4714 = vmatprep.mubr.msk.f32.mxu0 %vm31_vm0, %v3729_v3 }
0x1b2f   :  { %4715 = vmatmul.mubr.msk.f32.vlgmr.msra.gmra.mrb[44].mxu0 %vm31_vm0, %v3730_v2 }
0x1b30   :  { %4910 = vmatprep.subr.bf16.mxu1 %v4909_v4 }
0x1b31   :  { %4912 = vmatpush3.bf16.msra.mxu1 %v4909_v4 }
0x1b34   :  { %4708 = vmatmul.mubr.msk.f32.vlgmr.msra.gmra.mrb[44].mxu1 %vm31_vm0, %v4688_v59 }
0x1c02   :  { %v4716_v5 = vpop.f32.mrb[44].mxu0 }
0x1c03   :  { %v3884_v6 = vpop.f32.mrb[45].mxu0 }
0x1c04   :  { %4721 = vmatprep.mubr.msk.f32.mxu1 %vm31_vm0, %v3884_v6 }
0x1c07   :  { %v4709_v7 = vpop.f32.mrb[44].mxu1 }
0x1c08   :  { %v3803_v8 = vpop.f32.mrb[45].mxu1 }
0x1c09   :  { %v4917_v9 = vpack.c.bf16 %v4709_v7, %v3803_v8  ;;  %4728 = vmatprep.mubr.msk.f32.mxu0 %vm31_vm0, %v3803_v8 }
0x1c0b   :  { %4918 = vmatprep.subr.bf16.mxu1 %v4917_v9 }
0x1c0c   :  { %4920 = vmatpush3.bf16.msra.mxu1 %v4917_v9 }
0x1c0f   :  { %4722 = vmatmul.mubr.msk.f32.vlgmr.msra.gmra.mrb[46].mxu1 %vm31_vm0, %v4716_v5 }
0x1ce2   :  { %v4723_v10 = vpop.f32.mrb[46].mxu1 }
0x1ce3   :  { %v3975_v11 = vsub.f32 %v5045_v55, %v4723_v10  ;;  %v3965_v12 = vpop.f32.mrb[47].mxu1 }
0x1ce4   :  { %v3974_v13 = vsub.f32 %v5048_v56, %v3965_v12 }
0x1ce5   :  { %v3977_v14 = vmul.f32 0.5, %v3975_v11 }
0x1ce6   :  { %v3976_v15 = vmul.f32 0.5, %v3974_v13 }
0x1ce8   :  { %v4921_v16 = vpack.c.bf16 %v3977_v14, %v3976_v15 }
0x1cea   :  { %4922 = vmatprep.subr.bf16.mxu0 %v4921_v16 }
0x1ceb   :  { %4924 = vmatpush3.bf16.msra.mxu0 %v4921_v16 }
0x1cee   :  { %4729 = vmatmul.mubr.msk.f32.vlgmr.msra.gmra.mrb[46].mxu0 %vm31_vm0, %v4709_v7 }
0x1dc1   :  { %v4730_v17 = vpop.f32.mrb[46].mxu0 }
0x1dc2   :  { %v4060_v18 = vmul.f32 %v4730_v17, %v5037_v53  ;;  %v4050_v19 = vpop.f32.mrb[47].mxu0 }
0x1dc3   :  { %v4059_v20 = vmul.f32 %v5028_v32, %v4050_v19  ;;  %v4077_v32 = vsel %vm4076_vm8, %v5032_v48, %v4075_v27 }
0x1dc4   :  { %v4062_v21 = vsel %vm31_vm0, %v4060_v18, 0.0  ;;  %v4080_v31 = vsel %vm4078_vm9, %v4079_v30, %v4077_v32 }
0x1dc5   :  { %v4061_v55 = vsel %vm31_vm0, %v4059_v20, 0.0 }
0x1dc6   :  { %v4063_v22 = vadd.f32 %v4062_v21, %v4061_v55 }
0x1dc8   :  { %4064 = vadd.xlane.f32.xlu1 %v4063_v22 }
0x1e55   :  { %v4065_v56 = vpop.xlane.xlu1 %4064 }
0x1e56   :  { %v4066_v23 = vrot.slane %v4065_v56, 4 }
0x1e58   :  { %v4067_v25 = vadd.f32 %v4066_v23, %v4065_v56 }
0x1e5a   :  { %v4068_v26 = vrot.slane %v4067_v25, 2 }
0x1e5c   :  { %v4069_v28 = vadd.f32 %v4068_v26, %v4067_v25 }
0x1e5e   :  { %v4070_v53 = vrot.slane %v4069_v28, 1 }
0x1e60   :  { %v4071_v29 = vadd.f32 %v4070_v53, %v4069_v28 }
0x1e62   :  { %4931 = vpush %v4071_v29 }
0x1e63   :  { %4933 = vpush %v4080_v31 }
0x1e93   :  { %s4932_s27 = spop %4931 }
0x1e94   :  { %s4934_s28 = spop %4933 }
0x1e95   :  { %s4082_s29 = smul.f32 %s4934_s28, %s4932_s27 }
0x1e97   :  { %s4084_s4 = smul.f32 %s4082_s29, %s5199_s1 }
0x1e99   :  { %4086 = sst [smem:[#allocation7]] %s4084_s4 }
0x1e9a   :  { %4978 = shalt.err (!%p4975_p10)
}
0x1e9b   :  { %s4988_s12 = smov [#allocation7]  }
0x1e9c   :  { %4094 = dma.smem_to_hbm %s4988_s12, 16, %s5200_s2, [#allocation6]  }
0x1e9d   :  { %4981 = dma.done.wait [#allocation6], 16  }
0x1e9e   :  { %4982 = vsyncadd [#allocation6], 4294967280 }
0x1e9f   :  { %4098 = sfence }
0x1ea0   :  { %4099 = vsyncpa [#allocation5], 1 }
0x1ea1   :  { %4100 = vsyncpa [#allocation6], 1 }

</bundles_post_ra>
